<compile_context>
chip_gen: v5e
topology: v5e:2x2
jax: 0.10.0
libtpu: 0.0.40
codegen_flags: <defaults>
</compile_context>

<pallas_src>
import jax
import jax.numpy as jnp
from jax import lax
from jax.experimental import pallas as pl
from jax.experimental.pallas import tpu as pltpu

LANES = 128            # vreg lane width (last dim)
SUBLANES = 8           # f32 vreg sublane height
MAX_ACC_ROWS = 32      # accumulator height: up to 4 independent f32 vregs
MAX_BLOCK_ROWS = 4096  # 4096 x 128 f32 = 2 MiB per input block


def _round_up(v, m):
    return ((v + m - 1) // m) * m


def _core_split():
    """(num_core_splits, leading-axis semantics) for the local TPU generation."""
    try:
        kind = jax.devices()[0].device_kind.lower()
    except Exception:
        return 1, None
    if "v7" in kind:
        # Two TensorCores per chip: make the cross-core split explicit.
        return 2, getattr(pltpu, "CORE_PARALLEL", pltpu.PARALLEL)
    if ("v4" in kind) or ("v5p" in kind):
        # Megacore generations.
        return 2, pltpu.PARALLEL
    # v5e / v6e: single TensorCore -> a split would just halve block size.
    return 1, None


def _make_kernel(*, block_rows, acc_rows, valid_rows, chunks_per_core, two_axis):
    def kernel(x_ref, y_ref, out_ref):
        if two_axis:
            c = pl.program_id(0)
            i = pl.program_id(1)
            logical_block = c * chunks_per_core + i
        else:
            i = pl.program_id(0)
            logical_block = i

        @pl.when(i == 0)
        def _init():
            out_ref[...] = jnp.zeros_like(out_ref)

        # Row mask: zeroes the ragged tail of the last block and any overhang
        # grid steps introduced by the core split (mem-bound kernel -> the VPU
        # has ample slack for the iota/compare/select).
        row0 = logical_block * block_rows
        row_idx = lax.broadcasted_iota(jnp.int32, (block_rows, LANES), 0) + row0
        mask = row_idx < valid_rows

        x = x_ref[...].astype(jnp.float32)
        y = y_ref[...].astype(jnp.float32)
        # sigmoid(x) = 0.5 * (tanh(0.5*x) + 1): a single EUP op per element.
        prod = (0.5 * (jnp.tanh(0.5 * x) + 1.0)) * y
        prod = jnp.where(mask, prod, 0.0)
        # (block_rows,128) -> (block_rows//acc_rows, acc_rows, 128): pure
        # VPU adds into acc_rows//8 independent accumulator vregs resident in
        # the output block (constant block index along the reduction axis).
        out_ref[...] += prod.reshape(-1, acc_rows, LANES).sum(axis=0)

    return kernel


def net_x_forward(x, y, *, n=None, max_block_rows=MAX_BLOCK_ROWS,
                  num_core_splits=None):
    """mean(sigmoid(x) * y).

    x, y: either 1-D of length n, or pre-shaped/zero-padded (rows, 128) with
    the true element count passed via `n` (lets the parameter be stored
    pre-laid-out so no per-call pad/copy is needed).
    """
    if n is None:
        assert x.ndim == 1, "pass n= when supplying pre-shaped (rows,128) inputs"
        n = x.shape[0]
    if n == 0:
        return jnp.float32(jnp.nan)  # torch: mean of empty tensor is nan

    valid_rows = pl.cdiv(n, LANES)              # rows holding real data
    rows8 = _round_up(valid_rows, SUBLANES)     # physical rows (sublane aligned)

    def as_rows(a):
        if a.ndim == 2:
            assert a.shape == (rows8, LANES)
            return a
        assert a.shape == (n,)
        pad = rows8 * LANES - n                 # <= 8*128-1 elements
        if pad:
            a = jnp.pad(a, (0, pad))            # sigmoid(0)*0 == 0 in the tail
        return a.reshape(rows8, LANES)

    x2 = as_rows(x)
    y2 = as_rows(y)

    # Core split: explicit only when the chip has 2 TCs and the work is big
    # enough to matter.
    if num_core_splits is not None:
        splits, lead_sem = max(1, int(num_core_splits)), pltpu.PARALLEL
    else:
        splits, lead_sem = _core_split()
        if splits > 1 and rows8 < 8 * MAX_ACC_ROWS:
            splits, lead_sem = 1, None

    # Largest block that fits, never exceeding the (sublane-aligned) array.
    max_block_rows = _round_up(max(SUBLANES, max_block_rows), SUBLANES)
    block_rows = min(max_block_rows, _round_up(pl.cdiv(rows8, splits), SUBLANES))
    # Accumulator height: largest of {32,16,8} dividing block_rows.
    if block_rows % 32 == 0:
        acc_rows = 32
    elif block_rows % 16 == 0:
        acc_rows = 16
    else:
        acc_rows = 8

    total_blocks = pl.cdiv(rows8, block_rows)

    if splits > 1:
        chunks_per_core = pl.cdiv(total_blocks, splits)
        grid = (splits, chunks_per_core)

        def in_map(c, i):
            b = c * chunks_per_core + i
            # Clamp: overhang steps re-read the last block (their contribution
            # is masked to zero in-kernel) instead of issuing OOB DMAs.
            return (jnp.minimum(b, total_blocks - 1), 0)

        out_map = lambda c, i: (c, 0)
        dim_sem = (lead_sem, pltpu.ARBITRARY)
    else:
        chunks_per_core = total_blocks
        grid = (total_blocks,)
        in_map = lambda i: (i, 0)
        out_map = lambda i: (0, 0)
        dim_sem = (pltpu.ARBITRARY,)

    kernel = _make_kernel(
        block_rows=block_rows,
        acc_rows=acc_rows,
        valid_rows=valid_rows,
        chunks_per_core=chunks_per_core,
        two_axis=splits > 1,
    )

    partials = pl.pallas_call(
        kernel,
        out_shape=jax.ShapeDtypeStruct((splits * acc_rows, LANES), jnp.float32),
        grid=grid,
        in_specs=[
            pl.BlockSpec((block_rows, LANES), in_map),
            pl.BlockSpec((block_rows, LANES), in_map),
        ],
        out_specs=pl.BlockSpec((acc_rows, LANES), out_map),
        compiler_params=pltpu.CompilerParams(dimension_semantics=dim_sem),
    )(x2, y2)

    # Single tiny cross-lane/sublane reduction + mean; leave it to XLA.
    return jnp.sum(partials) / jnp.float32(n)


if __name__ == "__main__":
    key = jax.random.PRNGKey(0)
    k_y, k_x = jax.random.split(key)

    # N plays the role of tr.data.shape[0]; intentionally NOT a multiple of
    # 128 to exercise the lane-pad + in-kernel row-mask path.
    N = 5000

    # Parameter x: matches torch.nn.Parameter(torch.zeros(N)) in __init__.
    x_param = jnp.zeros((N,), dtype=jnp.float32)
    y_in = jax.random.normal(k_y, (N,), dtype=jnp.float32)

    out = jax.block_until_ready(net_x_forward(x_param, y_in))
    ref = jnp.mean(jax.nn.sigmoid(x_param) * y_in)
    assert jnp.allclose(out, ref, atol=2e-6, rtol=1e-5), (out, ref)

    # Non-zero parameter + tiny blocks: forces a multi-step accumulation with
    # a ragged (masked) final block.
    x_rand = jax.random.normal(k_x, (N,), dtype=jnp.float32)
    out2 = jax.block_until_ready(net_x_forward(x_rand, y_in, max_block_rows=32))
    ref2 = jnp.mean(jax.nn.sigmoid(x_rand) * y_in)
    assert jnp.allclose(out2, ref2, atol=2e-6, rtol=1e-5), (out2, ref2)

    # Exercise the explicit 2-way core-split path (a serial-but-correct 2-step
    # loop on single-core chips; real 2x split on v7x/megacore).
    out3 = jax.block_until_ready(
        net_x_forward(x_rand, y_in, max_block_rows=32, num_core_splits=2))
    assert jnp.allclose(out3, ref2, atol=2e-6, rtol=1e-5), (out3, ref2)

    print("KERNEL_OK")
</pallas_src>

<mosaic_0001>
module attributes {stable_mosaic.version = 11 : i64} {
  func.func @kernel(%arg0: i32, %arg1: memref<40x128xf32, #tpu.memory_space<vmem>>, %arg2: memref<40x128xf32, #tpu.memory_space<vmem>>, %arg3: memref<8x128xf32, #tpu.memory_space<vmem>>) attributes {dimension_semantics = [#tpu.dimension_semantics<arbitrary>], iteration_bounds = array<i64: 1>, scalar_prefetch = 0 : i64, scratch_operands = 0 : i64, tpu.core_type = #tpu.core_type<tc>, window_params = [{transform_indices = @transform_0, window_bounds = array<i64: 40, 128>}, {transform_indices = @transform_1, window_bounds = array<i64: 40, 128>}, {pipeline_mode = #tpu.pipeline_mode<synchronous>, transform_indices = @transform_2, window_bounds = array<i64: 8, 128>}]} {
    %c0_i32 = arith.constant 0 : i32
    %0 = arith.cmpi eq, %arg0, %c0_i32 : i32
    %1 = arith.extui %0 : i1 to i32
    %c0_i32_0 = arith.constant 0 : i32
    %2 = arith.cmpi ne, %1, %c0_i32_0 : i32
    scf.if %2 {
      %cst_13 = arith.constant 0.000000e+00 : f32
      %26 = vector.broadcast %cst_13 : f32 to vector<8x128xf32>
      %c0_14 = arith.constant 0 : index
      %c0_15 = arith.constant 0 : index
      %27 = vector.load %arg3[%c0_14, %c0_15] : memref<8x128xf32, #tpu.memory_space<vmem>>, vector<8x128xf32>
      tpu.vector_store %arg3[%c0_14, %c0_15], %26 {strides = array<i32>} : memref<8x128xf32, #tpu.memory_space<vmem>>, vector<8x128xf32>,
    } else {
    }
    %c40_i32 = arith.constant 40 : i32
    %3 = arith.muli %arg0, %c40_i32 : i32
    %4 = tpu.iota {dimensions = array<i32: 0>} : vector<40x128xi32>
    %5 = vector.broadcast %3 : i32 to vector<40x128xi32>
    %6 = arith.addi %4, %5 : vector<40x128xi32>
    %c40_i32_1 = arith.constant 40 : i32
    %7 = vector.broadcast %c40_i32_1 : i32 to vector<40x128xi32>
    %8 = arith.cmpi slt, %6, %7 : vector<40x128xi32>
    %c0 = arith.constant 0 : index
    %c0_2 = arith.constant 0 : index
    %9 = vector.load %arg1[%c0, %c0_2] : memref<40x128xf32, #tpu.memory_space<vmem>>, vector<40x128xf32>
    %c0_3 = arith.constant 0 : index
    %c0_4 = arith.constant 0 : index
    %10 = vector.load %arg2[%c0_3, %c0_4] : memref<40x128xf32, #tpu.memory_space<vmem>>, vector<40x128xf32>
    %cst = arith.constant 5.000000e-01 : f32
    %11 = vector.broadcast %cst : f32 to vector<40x128xf32>
    %12 = arith.mulf %11, %9 : vector<40x128xf32>
    %13 = math.tanh %12 : vector<40x128xf32>
    %cst_5 = arith.constant 1.000000e+00 : f32
    %14 = vector.broadcast %cst_5 : f32 to vector<40x128xf32>
    %15 = arith.addf %13, %14 : vector<40x128xf32>
    %cst_6 = arith.constant 5.000000e-01 : f32
    %16 = vector.broadcast %cst_6 : f32 to vector<40x128xf32>
    %17 = arith.mulf %16, %15 : vector<40x128xf32>
    %18 = arith.mulf %17, %10 : vector<40x128xf32>
    %cst_7 = arith.constant 0.000000e+00 : f32
    %19 = vector.broadcast %cst_7 : f32 to vector<40x128xf32>
    %20 = arith.select %8, %18, %19 : vector<40x128xi1>, vector<40x128xf32>
    %c0_8 = arith.constant 0 : index
    %c0_9 = arith.constant 0 : index
    %21 = vector.load %arg3[%c0_8, %c0_9] : memref<8x128xf32, #tpu.memory_space<vmem>>, vector<8x128xf32>
    %22 = vector.shape_cast %20 : vector<40x128xf32> to vector<5x8x128xf32>
    %cst_10 = arith.constant dense<0.000000e+00> : vector<8x128xf32>
    %23 = vector.multi_reduction <add>, %22, %cst_10 [0] : vector<5x8x128xf32> to vector<8x128xf32>
    %24 = arith.addf %21, %23 : vector<8x128xf32>
    %c0_11 = arith.constant 0 : index
    %c0_12 = arith.constant 0 : index
    %25 = vector.load %arg3[%c0_11, %c0_12] : memref<8x128xf32, #tpu.memory_space<vmem>>, vector<8x128xf32>
    tpu.vector_store %arg3[%c0_11, %c0_12], %24 {strides = array<i32>} : memref<8x128xf32, #tpu.memory_space<vmem>>, vector<8x128xf32>,
    return
  }
  func.func @transform_0(%arg0: i32) -> (i32, i32) {
    %c0_i32 = arith.constant 0 : i32
    %c0_i32_0 = arith.constant 0 : i32
    return %arg0, %c0_i32 : i32, i32
  }
  func.func @transform_1(%arg0: i32) -> (i32, i32) {
    %c0_i32 = arith.constant 0 : i32
    %c0_i32_0 = arith.constant 0 : i32
    return %arg0, %c0_i32 : i32, i32
  }
  func.func @transform_2(%arg0: i32) -> (i32, i32) {
    %c0_i32 = arith.constant 0 : i32
    %c0_i32_0 = arith.constant 0 : i32
    %c0_i32_1 = arith.constant 0 : i32
    return %c0_i32, %c0_i32_0 : i32, i32
  }
}

</mosaic_0001>

<bundles_post_ra>
// kernel: tpu_custom_call.1
= control target key start
LH: loop header
LB: loop body
LE: loop exit
PB: predicated region body
PF: predicated region fallthrough
CT: control target
= control target key end

     0   :  { %7 = vsyncpa [#allocation3], 0  ;;  %s255_s0 = inlined_call_operand.hbm [shape: f32[40,128], index: 0, kind: input, shape index: {}]   ;;  %s256_s1 = inlined_call_operand.hbm [shape: f32[40,128], index: 1, kind: input, shape index: {}]   ;;  %s257_s2 = inlined_call_operand.hbm [shape: f32[8,128], index: 2, kind: output, shape index: {}]  }
   0x1   :  { %8 = vsyncpa [#allocation6], 0 }
   0x2   :  { %9 = vsyncpa [#allocation4], 0  ;;  %s14_s11 = sshll.u32 %s255_s0, 4  ;;  %s226_s12 = smov [#allocation2]   ;;  %s15_s11 = int_to_ptr.hbm [resolvable:$true] %s14_s11 }
   0x3   :  { %s16_s13 = sshll.u32 %s226_s12, 4  ;;  %s27_s16 = sshll.u32 %s256_s1, 4  ;;  %s17_s13 = int_to_ptr.vmem [resolvable:$true] %s16_s13  ;;  %s28_s16 = int_to_ptr.hbm [resolvable:$true] %s27_s16 }
   0x4   :  { %s227_s17 = smov 128   ;;  %s228_s18 = smov 8  }
   0x5   :  { %22 = dma.hbm_to_vmem [thread:$0]  %s15_s11, 640, %s17_s13, [#allocation3], %s227_s17, %s227_s17, %s228_s18  }
   0x6   :  { %s229_s19 = smov [#allocation5]  }
   0x7   :  { %s29_s20 = sshll.u32 %s229_s19, 4  ;;  %s30_s20 = int_to_ptr.vmem [resolvable:$true] %s29_s20 }
   0x8   :  { %35 = dma.hbm_to_vmem [thread:$0]  %s28_s16, 640, %s30_s20, [#allocation6], %s227_s17, %s227_s17, %s228_s18  }
   0x9   :  { %220 = dma.done.wait [#allocation3], 640  }
   0xa   :  { %221 = vsyncadd [#allocation3], 4294966656 }
   0xb   :  { %222 = dma.done.wait [#allocation6], 640  }
   0xc   :  { %223 = vsyncadd [#allocation6], 4294966656  ;;  %v67_v0 = vld [vmem:[#allocation2] sm:$0xff]  ;;  %v68_v1 = vld [vmem:[#allocation2 + $0x8] sm:$0xff]  ;;  %s230_s0 = smov [#allocation7]   ;;  %s121_s23 = sshll.u32 %s257_s2, 4  ;;  %s122_s23 = int_to_ptr.hbm [resolvable:$true] %s121_s23 }
   0xd   :  { %v69_v2 = vld [vmem:[#allocation2 + $0x10] sm:$0xff]  ;;  %v70_v3 = vld [vmem:[#allocation2 + $0x18] sm:$0xff]  ;;  %v71_v4 = vld [vmem:[#allocation2 + $0x20] sm:$0xff]  ;;  %v77_v5 = vmul.f32 0.5, %v67_v0  ;;  %v78_v6 = vmul.f32 0.5, %v68_v1  ;;  %s119_s1 = sshll.u32 %s230_s0, 4  ;;  %s120_s1 = int_to_ptr.vmem [resolvable:$true] %s119_s1 }
   0xe   :  { %v79_v7 = vmul.f32 0.5, %v69_v2  ;;  %v80_v8 = vmul.f32 0.5, %v70_v3  ;;  %v81_v9 = vmul.f32 0.5, %v71_v4  ;;  %v72_v14 = vld [vmem:[#allocation5] sm:$0xff]  ;;  %v73_v17 = vld [vmem:[#allocation5 + $0x8] sm:$0xff]  ;;  %v74_v21 = vld [vmem:[#allocation5 + $0x10] sm:$0xff] }
   0xf   :  { %138 = vtanh.f32 %v77_v5  ;;  %v75_v24 = vld [vmem:[#allocation5 + $0x18] sm:$0xff]  ;;  %v76_v30 = vld [vmem:[#allocation5 + $0x20] sm:$0xff] }
  0x10   :  { %140 = vtanh.f32 %v78_v6 }
  0x11   :  { %142 = vtanh.f32 %v79_v7 }
  0x12   :  { %144 = vtanh.f32 %v80_v8 }
  0x13   :  { %146 = vtanh.f32 %v81_v9 }
  0x15   :  { %v139_v10 = vpop.eup %138 }
  0x16   :  { %v141_v11 = vpop.eup %140  ;;  %v87_v12 = vadd.f32 1.0, %v139_v10 }
  0x17   :  { %v143_v13 = vpop.eup %142  ;;  %v88_v15 = vadd.f32 1.0, %v141_v11 }
  0x18   :  { %v145_v16 = vpop.eup %144  ;;  %v89_v18 = vadd.f32 1.0, %v143_v13  ;;  %v92_v19 = vmul.f32 0.5, %v87_v12 }
  0x19   :  { %v147_v20 = vpop.eup %146  ;;  %v90_v22 = vadd.f32 1.0, %v145_v16  ;;  %v93_v23 = vmul.f32 0.5, %v88_v15 }
  0x1a   :  { %v91_v25 = vadd.f32 1.0, %v147_v20  ;;  %v94_v26 = vmul.f32 0.5, %v89_v18  ;;  %v97_v27 = vmul.f32 %v92_v19, %v72_v14 }
  0x1b   :  { %v95_v28 = vmul.f32 0.5, %v90_v22  ;;  %v98_v29 = vmul.f32 %v93_v23, %v73_v17 }
  0x1c   :  { %v96_v31 = vmul.f32 0.5, %v91_v25  ;;  %v99_v32 = vmul.f32 %v94_v26, %v74_v21 }
  0x1d   :  { %v100_v33 = vmul.f32 %v95_v28, %v75_v24  ;;  %v108_v34 = vadd.f32 %v98_v29, %v97_v27 }
  0x1e   :  { %v101_v35 = vmul.f32 %v96_v31, %v76_v30 }
  0x1f   :  { %v109_v36 = vadd.f32 %v108_v34, %v99_v32 }
  0x21   :  { %v110_v37 = vadd.f32 %v109_v36, %v100_v33 }
  0x23   :  { %v111_v38 = vadd.f32 %v110_v37, %v101_v35 }
  0x25   :  { %113 = vst [vmem:[#allocation7] sm:$0xff] %v111_v38 }
  0x26   :  { %124 = dma.vmem_to_hbm [thread:$0]  %s120_s1, 128, %s122_s23, [#allocation4]  }
  0x27   :  { %224 = dma.done.wait [#allocation4], 128  }
  0x28   :  { %225 = vsyncadd [#allocation4], 4294967168 }
  0x29   :  { %129 = vsyncpa [#allocation3], 1 }
  0x2a   :  { %130 = vsyncpa [#allocation6], 1 }
  0x2b   :  { %131 = vsyncpa [#allocation4], 1 }

</bundles_post_ra>
